<compile_context>
chip_gen: v7x
topology: tpu7x:2x2x1
jax: 0.10.0
libtpu: 0.0.40
codegen_flags: <defaults>
</compile_context>

<pallas_src>
import functools

import jax
import jax.numpy as jnp
from jax.experimental import pallas as pl
from jax.experimental.pallas import tpu as pltpu

D = 32          # feature dim of the PyTorch module
LANES = 128     # TPU lane width
PACK = LANES // D  # 4 original rows per repacked (lane-dense) row


def _fused_mlp_kernel(x_ref, other_ref, w12_ref, w2_ref, b12_ref, o_ref):
    # Two independent MXU dots; combine + bias on the VPU (kernel is
    # HBM-bandwidth bound, so the VALU work rides free).
    acc = jnp.dot(x_ref[...], w12_ref[...], preferred_element_type=jnp.float32)
    acc = acc + jnp.dot(
        other_ref[...], w2_ref[...], preferred_element_type=jnp.float32
    )
    o_ref[...] = (acc + b12_ref[...]).astype(o_ref.dtype)


@functools.partial(jax.jit, static_argnames=("tile_rows",))
def fused_linear_add_linear(x1, other, w1, b1, w2, b2, *, tile_rows=8192):
    """Computes linear2(linear1(x1) + other) with a lane-dense Pallas kernel.

    x1, other : (N, 32) float32
    w1, w2    : (32, 32) float32, stored as [in_features, out_features]
    b1, b2    : (32,)    float32
    """
    N, d = x1.shape
    assert d == D, f"expected feature dim {D}, got {d}"

    # --- one-time tiny parameter pre-fusion (XLA, outside the kernel) -------
    w12 = w1 @ w2                        # (32, 32)
    b12 = (b1 @ w2 + b2).reshape(1, D)   # (1, 32)

    # --- lane-dense repack: 4 original rows per 128-wide repacked row -------
    n_pad = pl.cdiv(N, PACK) * PACK      # pad at most 3 rows (only if N%4 != 0)
    if n_pad != N:
        pad = n_pad - N
        x1 = jnp.pad(x1, ((0, pad), (0, 0)))
        other = jnp.pad(other, ((0, pad), (0, 0)))
    rows = n_pad // PACK
    x_r = x1.reshape(rows, LANES)        # free row-major reshape
    o_r = other.reshape(rows, LANES)

    eye = jnp.eye(PACK, dtype=w12.dtype)
    w12_bd = jnp.kron(eye, w12)          # (128, 128) block-diagonal
    w2_bd = jnp.kron(eye, w2)            # (128, 128) block-diagonal
    b12_r = jnp.tile(b12, (1, PACK))     # (1, 128)

    # --- pick the repacked-row tile -----------------------------------------
    max_tile = max(8, (tile_rows // PACK // 8) * 8)   # default 2048 rows ≈ 1 MiB
    if rows <= max_tile:
        if rows >= 16:
            # Split into >=2 blocks so both v7x TensorCores get work.
            tn = ((pl.cdiv(rows, 2) + 7) // 8) * 8
        else:
            tn = rows                    # single full-extent block (tiny input)
    else:
        tn = max_tile
    grid = (pl.cdiv(rows, tn),)          # partial tail block masked by Pallas

    row_spec = pl.BlockSpec((tn, LANES), lambda i: (i, 0))
    w_spec = pl.BlockSpec((LANES, LANES), lambda i: (0, 0))   # VMEM-resident
    b_spec = pl.BlockSpec((1, LANES), lambda i: (0, 0))       # VMEM-resident

    out_r = pl.pallas_call(
        _fused_mlp_kernel,
        out_shape=jax.ShapeDtypeStruct((rows, LANES), x1.dtype),
        grid=grid,
        in_specs=[row_spec, row_spec, w_spec, w_spec, b_spec],
        out_specs=row_spec,
        compiler_params=pltpu.CompilerParams(
            dimension_semantics=("parallel",),
        ),
    )(x_r, o_r, w12_bd, w2_bd, b12_r)

    out = out_r.reshape(n_pad, D)
    if n_pad != N:
        out = out[:N]
    return out


if __name__ == "__main__":
    key = jax.random.PRNGKey(0)
    k_x, k_o, k_w1, k_b1, k_w2, k_b2 = jax.random.split(key, 6)

    N = 8
    x1 = jax.random.normal(k_x, (N, D), dtype=jnp.float32)
    other = jax.random.normal(k_o, (N, D), dtype=jnp.float32)

    # Deterministic parameter init mimicking nn.Linear's U(-1/sqrt(in), 1/sqrt(in)).
    bound = 1.0 / jnp.sqrt(jnp.float32(D))
    # PyTorch stores weight as (out, in); we keep it as (in, out) for x @ W.
    w1 = jax.random.uniform(k_w1, (D, D), jnp.float32, -bound, bound)
    b1 = jax.random.uniform(k_b1, (D,), jnp.float32, -bound, bound)
    w2 = jax.random.uniform(k_w2, (D, D), jnp.float32, -bound, bound)
    b2 = jax.random.uniform(k_b2, (D,), jnp.float32, -bound, bound)

    out = fused_linear_add_linear(x1, other, w1, b1, w2, b2)
    jax.block_until_ready(out)

    ref = (x1 @ w1 + b1 + other) @ w2 + b2
    assert out.shape == (N, D)
    assert jnp.allclose(out, ref, atol=1e-4, rtol=1e-4), (
        float(jnp.max(jnp.abs(out - ref)))
    )

    # Larger, tile-splitting case (2500 % 4 == 0 -> no pad, partial tail block).
    Nb = 2500
    kx2, ko2 = jax.random.split(jax.random.PRNGKey(1))
    xb = jax.random.normal(kx2, (Nb, D), dtype=jnp.float32)
    ob = jax.random.normal(ko2, (Nb, D), dtype=jnp.float32)
    outb = fused_linear_add_linear(xb, ob, w1, b1, w2, b2)
    jax.block_until_ready(outb)
    refb = (xb @ w1 + b1 + ob) @ w2 + b2
    assert outb.shape == (Nb, D)
    assert jnp.allclose(outb, refb, atol=1e-4, rtol=1e-4), (
        float(jnp.max(jnp.abs(outb - refb)))
    )

    # Non-multiple-of-4 N exercises the tiny 3-row pad path.
    Nc = 37
    kx3, ko3 = jax.random.split(jax.random.PRNGKey(2))
    xc = jax.random.normal(kx3, (Nc, D), dtype=jnp.float32)
    oc = jax.random.normal(ko3, (Nc, D), dtype=jnp.float32)
    outc = fused_linear_add_linear(xc, oc, w1, b1, w2, b2)
    jax.block_until_ready(outc)
    refc = (xc @ w1 + b1 + oc) @ w2 + b2
    assert outc.shape == (Nc, D)
    assert jnp.allclose(outc, refc, atol=1e-4, rtol=1e-4), (
        float(jnp.max(jnp.abs(outc - refc)))
    )

    print("KERNEL_OK")
</pallas_src>

<mosaic_0001>
module attributes {stable_mosaic.version = 11 : i64} {
  func.func @_fused_mlp_kernel(%arg0: i32, %arg1: memref<2x128xf32, #tpu.memory_space<vmem>>, %arg2: memref<2x128xf32, #tpu.memory_space<vmem>>, %arg3: memref<128x128xf32, #tpu.memory_space<vmem>>, %arg4: memref<128x128xf32, #tpu.memory_space<vmem>>, %arg5: memref<1x128xf32, #tpu.memory_space<vmem>>, %arg6: memref<2x128xf32, #tpu.memory_space<vmem>>) attributes {dimension_semantics = [#tpu.dimension_semantics<parallel>], iteration_bounds = array<i64: 1>, scalar_prefetch = 0 : i64, scratch_operands = 0 : i64, tpu.core_type = #tpu.core_type<tc>, window_params = [{transform_indices = @transform_0, window_bounds = array<i64: 2, 128>}, {transform_indices = @transform_1, window_bounds = array<i64: 2, 128>}, {pipeline_mode = #tpu.pipeline_mode<synchronous>, transform_indices = @transform_2, window_bounds = array<i64: 128, 128>}, {pipeline_mode = #tpu.pipeline_mode<synchronous>, transform_indices = @transform_3, window_bounds = array<i64: 128, 128>}, {pipeline_mode = #tpu.pipeline_mode<synchronous>, transform_indices = @transform_4, window_bounds = array<i64: 1, 128>}, {transform_indices = @transform_5, window_bounds = array<i64: 2, 128>}]} {
    %c0 = arith.constant 0 : index
    %c0_0 = arith.constant 0 : index
    %0 = vector.load %arg1[%c0, %c0_0] : memref<2x128xf32, #tpu.memory_space<vmem>>, vector<2x128xf32>
    %c0_1 = arith.constant 0 : index
    %c0_2 = arith.constant 0 : index
    %1 = vector.load %arg3[%c0_1, %c0_2] : memref<128x128xf32, #tpu.memory_space<vmem>>, vector<128x128xf32>
    %cst = arith.constant dense<0.000000e+00> : vector<2x128xf32>
    %2 = tpu.matmul %0, %1, %cst {dimension_numbers = #tpu.dot_dimension_numbers<[1], [0], [0], [1], [0, 0, 1, 1], [], []>} : vector<2x128xf32>, vector<128x128xf32>, vector<2x128xf32> -> vector<2x128xf32>
    %c0_3 = arith.constant 0 : index
    %c0_4 = arith.constant 0 : index
    %3 = vector.load %arg2[%c0_3, %c0_4] : memref<2x128xf32, #tpu.memory_space<vmem>>, vector<2x128xf32>
    %c0_5 = arith.constant 0 : index
    %c0_6 = arith.constant 0 : index
    %4 = vector.load %arg4[%c0_5, %c0_6] : memref<128x128xf32, #tpu.memory_space<vmem>>, vector<128x128xf32>
    %cst_7 = arith.constant dense<0.000000e+00> : vector<2x128xf32>
    %5 = tpu.matmul %3, %4, %cst_7 {dimension_numbers = #tpu.dot_dimension_numbers<[1], [0], [0], [1], [0, 0, 1, 1], [], []>} : vector<2x128xf32>, vector<128x128xf32>, vector<2x128xf32> -> vector<2x128xf32>
    %6 = arith.addf %2, %5 : vector<2x128xf32>
    %c0_8 = arith.constant 0 : index
    %c0_9 = arith.constant 0 : index
    %7 = vector.load %arg5[%c0_8, %c0_9] : memref<1x128xf32, #tpu.memory_space<vmem>>, vector<1x128xf32>
    %8 = vector.broadcast %7 : vector<1x128xf32> to vector<2x128xf32>
    %9 = arith.addf %6, %8 : vector<2x128xf32>
    %c0_10 = arith.constant 0 : index
    %c0_11 = arith.constant 0 : index
    %10 = vector.load %arg6[%c0_10, %c0_11] : memref<2x128xf32, #tpu.memory_space<vmem>>, vector<2x128xf32>
    tpu.vector_store %arg6[%c0_10, %c0_11], %9 {strides = array<i32>} : memref<2x128xf32, #tpu.memory_space<vmem>>, vector<2x128xf32>,
    return
  }
  func.func @transform_0(%arg0: i32) -> (i32, i32) {
    %c0_i32 = arith.constant 0 : i32
    %c0_i32_0 = arith.constant 0 : i32
    return %arg0, %c0_i32 : i32, i32
  }
  func.func @transform_1(%arg0: i32) -> (i32, i32) {
    %c0_i32 = arith.constant 0 : i32
    %c0_i32_0 = arith.constant 0 : i32
    return %arg0, %c0_i32 : i32, i32
  }
  func.func @transform_2(%arg0: i32) -> (i32, i32) {
    %c0_i32 = arith.constant 0 : i32
    %c0_i32_0 = arith.constant 0 : i32
    %c0_i32_1 = arith.constant 0 : i32
    return %c0_i32, %c0_i32_0 : i32, i32
  }
  func.func @transform_3(%arg0: i32) -> (i32, i32) {
    %c0_i32 = arith.constant 0 : i32
    %c0_i32_0 = arith.constant 0 : i32
    %c0_i32_1 = arith.constant 0 : i32
    return %c0_i32, %c0_i32_0 : i32, i32
  }
  func.func @transform_4(%arg0: i32) -> (i32, i32) {
    %c0_i32 = arith.constant 0 : i32
    %c0_i32_0 = arith.constant 0 : i32
    %c0_i32_1 = arith.constant 0 : i32
    return %c0_i32, %c0_i32_0 : i32, i32
  }
  func.func @transform_5(%arg0: i32) -> (i32, i32) {
    %c0_i32 = arith.constant 0 : i32
    %c0_i32_0 = arith.constant 0 : i32
    return %arg0, %c0_i32 : i32, i32
  }
}

</mosaic_0001>

<bundles_post_ra>
// kernel: fused_linear_add_linear.1
= control target key start
LH: loop header
LB: loop body
LE: loop exit
PB: predicated region body
PF: predicated region fallthrough
CT: control target
= control target key end

     0   :  { %v363_v0 = vmov 0.0|0.0   ;;  %vm364_vm0 = vmmov 0   ;;  %v365_v8 = vmov 0.0   ;;  %s520_s3 = inlined_call_operand.vmem [shape: f32[128,128], index: 3, kind: input, shape index: {}]   ;;  %s521_s2 = inlined_call_operand.vmem [shape: f32[128,128], index: 2, kind: input, shape index: {}]   ;;  %s522_s1 = inlined_call_operand.vmem [shape: f32[2,128], index: 1, kind: input, shape index: {}]   ;;  %s523_s0 = inlined_call_operand.vmem [shape: f32[2,128], index: 0, kind: input, shape index: {}]   ;;  %s524_s4 = inlined_call_operand.vmem [shape: f32[1,128], index: 4, kind: input, shape index: {}]   ;;  %s525_s5 = inlined_call_operand.vmem [shape: f32[2,128], index: 5, kind: output, shape index: {}]  }
   0x1   :  { %312 = vmatprep.subr.bf16.mxu0 %v363_v0  ;;  %336 = vmatprep.subr.bf16.mxu1 %v363_v0  ;;  %v38_v1 = vld [vmem:[%s520_s3] sm:$0xff]  ;;  %v39_v2 = vld [vmem:[%s520_s3 + $0x8] sm:$0xff]  ;;  %v40_v6 = vld [vmem:[%s520_s3 + $0x10] sm:$0xff] }
   0x2   :  { %v21_v3 = vld [vmem:[%s521_s2] sm:$0xff]  ;;  %v313_v4 = vpack.c.bf16 %v39_v2, %v38_v1  ;;  %v22_v5 = vld [vmem:[%s521_s2 + $0x8] sm:$0xff]  ;;  %v41_v7 = vld [vmem:[%s520_s3 + $0x18] sm:$0xff]  ;;  %274 = vmatprep.mubr.msk.f32.mxu0 %vm364_vm0, %v365_v8  ;;  %309 = vmatprep.mubr.msk.f32.mxu1 %vm364_vm0, %v365_v8 }
   0x3   :  { %v337_v9 = vpack.c.bf16 %v22_v5, %v21_v3  ;;  %v23_v10 = vld [vmem:[%s521_s2 + $0x10] sm:$0xff]  ;;  %v24_v11 = vld [vmem:[%s521_s2 + $0x18] sm:$0xff]  ;;  %v316_v12 = vpack.c.bf16 %v41_v7, %v40_v6  ;;  %v42_v14 = vld [vmem:[%s520_s3 + $0x20] sm:$0xff] }
   0x4   :  { %314 = vmatpush3.bf16.msra.mxu0 %v313_v4  ;;  %v340_v13 = vpack.c.bf16 %v24_v11, %v23_v10  ;;  %v43_v15 = vld [vmem:[%s520_s3 + $0x28] sm:$0xff]  ;;  %v25_v16 = vld [vmem:[%s521_s2 + $0x20] sm:$0xff]  ;;  %v44_v20 = vld [vmem:[%s520_s3 + $0x30] sm:$0xff] }
   0x5   :  { %338 = vmatpush3.bf16.msra.mxu1 %v337_v9  ;;  %315 = vmatprep.subr.bf16.mxu0 %v363_v0  ;;  %v26_v17 = vld [vmem:[%s521_s2 + $0x28] sm:$0xff]  ;;  %v319_v18 = vpack.c.bf16 %v43_v15, %v42_v14  ;;  %v45_v21 = vld [vmem:[%s520_s3 + $0x38] sm:$0xff]  ;;  %v27_v22 = vld [vmem:[%s521_s2 + $0x30] sm:$0xff] }
   0x6   :  { %339 = vmatprep.subr.bf16.mxu1 %v363_v0  ;;  %v343_v19 = vpack.c.bf16 %v26_v17, %v25_v16  ;;  %v28_v23 = vld [vmem:[%s521_s2 + $0x38] sm:$0xff]  ;;  %v322_v24 = vpack.c.bf16 %v45_v21, %v44_v20  ;;  %v46_v26 = vld [vmem:[%s520_s3 + $0x40] sm:$0xff]  ;;  %v47_v27 = vld [vmem:[%s520_s3 + $0x48] sm:$0xff] }
   0x7   :  { %v346_v25 = vpack.c.bf16 %v28_v23, %v27_v22  ;;  %v29_v28 = vld [vmem:[%s521_s2 + $0x40] sm:$0xff]  ;;  %v30_v29 = vld [vmem:[%s521_s2 + $0x48] sm:$0xff]  ;;  %v325_v30 = vpack.c.bf16 %v47_v27, %v46_v26  ;;  %v48_v32 = vld [vmem:[%s520_s3 + $0x50] sm:$0xff] }
   0x8   :  { %317 = vmatpush3.bf16.msra.mxu0 %v316_v12  ;;  %v349_v31 = vpack.c.bf16 %v30_v29, %v29_v28  ;;  %v49_v33 = vld [vmem:[%s520_s3 + $0x58] sm:$0xff]  ;;  %v31_v34 = vld [vmem:[%s521_s2 + $0x50] sm:$0xff]  ;;  %v50_v38 = vld [vmem:[%s520_s3 + $0x60] sm:$0xff] }
   0x9   :  { %341 = vmatpush3.bf16.msra.mxu1 %v340_v13  ;;  %318 = vmatprep.subr.bf16.mxu0 %v363_v0  ;;  %v32_v35 = vld [vmem:[%s521_s2 + $0x58] sm:$0xff]  ;;  %v328_v36 = vpack.c.bf16 %v49_v33, %v48_v32  ;;  %v51_v39 = vld [vmem:[%s520_s3 + $0x68] sm:$0xff]  ;;  %v33_v40 = vld [vmem:[%s521_s2 + $0x60] sm:$0xff] }
   0xa   :  { %342 = vmatprep.subr.bf16.mxu1 %v363_v0  ;;  %v352_v37 = vpack.c.bf16 %v32_v35, %v31_v34  ;;  %v34_v41 = vld [vmem:[%s521_s2 + $0x68] sm:$0xff]  ;;  %v331_v42 = vpack.c.bf16 %v51_v39, %v50_v38  ;;  %v52_v44 = vld [vmem:[%s520_s3 + $0x70] sm:$0xff]  ;;  %v53_v45 = vld [vmem:[%s520_s3 + $0x78] sm:$0xff] }
   0xb   :  { %v355_v43 = vpack.c.bf16 %v34_v41, %v33_v40  ;;  %v35_v46 = vld [vmem:[%s521_s2 + $0x70] sm:$0xff]  ;;  %v36_v47 = vld [vmem:[%s521_s2 + $0x78] sm:$0xff]  ;;  %v334_v48 = vpack.c.bf16 %v53_v45, %v52_v44  ;;  %v37_v50 = vld [vmem:[%s522_s1] sm:$0x3] }
   0xc   :  { %320 = vmatpush3.bf16.msra.mxu0 %v319_v18  ;;  %v358_v49 = vpack.c.bf16 %v36_v47, %v35_v46  ;;  %v20_v51 = vld [vmem:[%s523_s0] sm:$0x3] }
   0xd   :  { %344 = vmatpush3.bf16.msra.mxu1 %v343_v19  ;;  %321 = vmatprep.subr.bf16.mxu0 %v363_v0  ;;  %v207_v54 = vld [vmem:[%s524_s4] ss:$0 sm:$0xff] }
   0xe   :  { %345 = vmatprep.subr.bf16.mxu1 %v363_v0 }
  0x10   :  { %323 = vmatpush3.bf16.msra.mxu0 %v322_v24 }
  0x11   :  { %347 = vmatpush3.bf16.msra.mxu1 %v346_v25  ;;  %324 = vmatprep.subr.bf16.mxu0 %v363_v0 }
  0x12   :  { %348 = vmatprep.subr.bf16.mxu1 %v363_v0 }
  0x14   :  { %326 = vmatpush3.bf16.msra.mxu0 %v325_v30 }
  0x15   :  { %350 = vmatpush3.bf16.msra.mxu1 %v349_v31  ;;  %327 = vmatprep.subr.bf16.mxu0 %v363_v0 }
  0x16   :  { %351 = vmatprep.subr.bf16.mxu1 %v363_v0 }
  0x18   :  { %329 = vmatpush3.bf16.msra.mxu0 %v328_v36 }
  0x19   :  { %353 = vmatpush3.bf16.msra.mxu1 %v352_v37  ;;  %330 = vmatprep.subr.bf16.mxu0 %v363_v0 }
  0x1a   :  { %354 = vmatprep.subr.bf16.mxu1 %v363_v0 }
  0x1c   :  { %332 = vmatpush3.bf16.msra.mxu0 %v331_v42 }
  0x1d   :  { %356 = vmatpush3.bf16.msra.mxu1 %v355_v43  ;;  %333 = vmatprep.subr.bf16.mxu0 %v363_v0 }
  0x1e   :  { %357 = vmatprep.subr.bf16.mxu1 %v363_v0 }
  0x20   :  { %335 = vmatpush3.bf16.msra.mxu0 %v334_v48 }
  0x21   :  { %359 = vmatpush3.bf16.msra.mxu1 %v358_v49 }
  0x23   :  { %275 = vmatmul.mubr.f32.vlgmr.msra.gmra.mrb[0].mxu0 %v37_v50 }
  0x24   :  { %310 = vmatmul.mubr.f32.vlgmr.msra.gmra.mrb[0].mxu1 %v20_v51 }
  0xf6   :  { %v120_v52 = vpop.f32.mrb[0].mxu0 }
  0xf7   :  { %v190_v53 = vpop.f32.mrb[0].mxu1  ;;  %v276_v55 = vpop.f32.mrb[1].mxu0 }
  0xf8   :  { %v191_v56 = vadd.f32 %v190_v53, %v120_v52  ;;  %v311_v57 = vpop.f32.mrb[1].mxu1 }
  0xfa   :  { %v201_v58 = vadd.f32 %v207_v54, %v191_v56 }
  0xfc   :  { %202 = vst [vmem:[%s525_s5] sm:$0x3] %v201_v58 }

</bundles_post_ra>
